<compile_context>
chip_gen: v5e
topology: v5e:2x2
jax: 0.10.0
libtpu: 0.0.40
codegen_flags: <defaults>
</compile_context>

<pallas_src>
import functools

import numpy as np

import jax
import jax.numpy as jnp
from jax.experimental import pallas as pl
from jax.experimental.pallas import tpu as pltpu


# ---------------------------------------------------------------------------
# Fused kernel: Conv2d -> BatchNorm2d (batch stats) -> ReLU -> MaxPool2d(2)
# ---------------------------------------------------------------------------
def _encoder_block_kernel(x_ref, t_ref, b_ref, g_ref, be_ref, s_ref, st_ref,
                          pe_ref, po_ref, o_ref, *, n_img, kh, ho, wp, cout,
                          count, eps):
    """All operands are whole-array VMEM blocks (single grid step).

    x_ref : (N, H, Cin*W)   input rows; minor index = ci*W + xw
    t_ref : (kh, Cin*W, L)  width-Toeplitz conv weight, L = Wo*Cout
    b_ref / g_ref / be_ref : (1, Cout)  conv bias / BN gamma / BN beta
    s_ref : (L, Cout)       one-hot lane -> channel reduction matrix
    st_ref: (Cout, L)       one-hot channel -> lane broadcast matrix
    pe_ref/ po_ref : (Hp, Ho)  one-hot even / odd pooled-row selectors
    o_ref : (N, Cout, Hp, Wp)  output, NCHW (written directly)
    """
    L = s_ref.shape[0]
    s_mat = s_ref[...]                     # (L, Cout)
    st_mat = st_ref[...]                   # (Cout, L)

    # Conv bias, broadcast to the (ox, co) lane layout (exact one-hot matmul).
    bias_w = jnp.dot(b_ref[...], st_mat, preferred_element_type=jnp.float32)   # (1, L)

    # ---- Pass 1: conv = kh width-Toeplitz MXU matmuls per image -------------
    acts = []
    colsum = jnp.zeros((1, L), jnp.float32)
    for n in range(n_img):
        y = jnp.zeros((ho, L), jnp.float32)
        for dy in range(kh):
            y = y + jnp.dot(x_ref[n, dy:dy + ho, :], t_ref[dy, :, :],
                            preferred_element_type=jnp.float32)
        y = y + bias_w                                      # (Ho, L)
        acts.append(y)                                      # stays in vregs
        colsum = colsum + jnp.sum(y, axis=0, keepdims=True)

    # ---- Batch statistics (two-pass variance, biased — PyTorch BN train) ----
    inv_cnt = 1.0 / count
    mean_c = jnp.dot(colsum, s_mat, preferred_element_type=jnp.float32) * inv_cnt  # (1, Cout)
    mean_w = jnp.dot(mean_c, st_mat, preferred_element_type=jnp.float32)           # (1, L)
    colssq = jnp.zeros((1, L), jnp.float32)
    for y in acts:
        d = y - mean_w
        colssq = colssq + jnp.sum(d * d, axis=0, keepdims=True)
    var_c = jnp.dot(colssq, s_mat, preferred_element_type=jnp.float32) * inv_cnt   # (1, Cout)
    scale_c = g_ref[...] * jax.lax.rsqrt(var_c + eps)                               # (1, Cout)
    shift_c = be_ref[...] - mean_c * scale_c
    scale_w = jnp.dot(scale_c, st_mat, preferred_element_type=jnp.float32)          # (1, L)
    shift_w = jnp.dot(shift_c, st_mat, preferred_element_type=jnp.float32)          # (1, L)

    # ---- BN + ReLU + 2x2 max-pool, stored directly in NCHW ------------------
    pe = pe_ref[...]                        # (Hp, Ho) one-hot: exact row select
    po = po_ref[...]
    wblk = cout * wp                        # lanes per horizontal-parity block
    for n in range(n_img):
        yn = jnp.maximum(acts[n] * scale_w + shift_w, 0.0)                           # (Ho, L)
        r_even = jnp.dot(pe, yn, preferred_element_type=jnp.float32)                 # (Hp, L)
        r_odd = jnp.dot(po, yn, preferred_element_type=jnp.float32)                  # (Hp, L)
        rows = jnp.maximum(r_even, r_odd)                   # vertical 2-pool
        pooled = jnp.maximum(rows[:, :wblk], rows[:, wblk:2 * wblk])                 # horizontal 2-pool
        for co in range(cout):              # contiguous lane slice per channel
            o_ref[n, co, :, :] = pooled[:, co * wp:(co + 1) * wp]                    # (Hp, Wp)


# ---------------------------------------------------------------------------
# Wrapper reproducing EncoderBlock.forward
# ---------------------------------------------------------------------------
@jax.jit
def encoder_block(x, w, b, gamma, beta):
    """x: (N, Cin, H, W); w: (Cout, Cin, kh, kw) [PyTorch]; b/gamma/beta: (Cout,)."""
    eps = 1e-5
    N, Cin, H, W = x.shape
    Cout, _, kh, kw = w.shape
    Ho, Wo = H - kh + 1, W - kw + 1            # padding=0 ("VALID")
    Hp, Wp = Ho // 2, Wo // 2                  # MaxPool2d(2), floor mode
    L = Wo * Cout

    # Input rows with the conv contraction dim (ci, xw) minor.  Single small
    # transpose that does not touch the minor dim (no im2col patches buffer).
    x_r = jnp.transpose(x, (0, 2, 1, 3)).reshape(N, H, Cin * W)

    # Lane order of the conv output: [even-ox | odd-ox | leftover-ox] blocks,
    # channel-major inside each block, so that (a) horizontal pooling is a max
    # of two contiguous lane halves and (b) each output channel is a contiguous
    # lane slice (direct NCHW store).  Leftover column (odd Wo) feeds stats only.
    lane_ox, lane_co = [], []
    for oxs in (range(0, 2 * Wp, 2), range(1, 2 * Wp, 2)):
        for co in range(Cout):
            for ox in oxs:
                lane_ox.append(ox)
                lane_co.append(co)
    for ox in range(2 * Wp, Wo):
        for co in range(Cout):
            lane_ox.append(ox)
            lane_co.append(co)
    lane_ox = np.asarray(lane_ox)
    lane_co = np.asarray(lane_co)

    # Width-Toeplitz conv weight: T[dy, ci*W+xw, lane(ox,co)] = w[co,ci,dy,xw-ox].
    sel = (np.arange(W)[None, :, None] ==
           (np.arange(Wo)[None, None, :] + np.arange(kw)[:, None, None])
           ).astype(np.float32)                                     # (kw, W, Wo)
    t_nat = jnp.einsum('dxo,qcyd->ycxoq', jnp.asarray(sel), w)      # (kh,Cin,W,Wo,Cout)
    t_toe = t_nat.reshape(kh, Cin * W, Wo, Cout)[:, :, lane_ox, lane_co]  # (kh,Cin*W,L)

    # Lane <-> channel one-hot matrices and pooled-row selectors (constants).
    s_mat = np.eye(Cout, dtype=np.float32)[lane_co]                 # (L, Cout)
    st_mat = np.ascontiguousarray(s_mat.T)                          # (Cout, L)
    p_even = np.zeros((Hp, Ho), np.float32)
    p_odd = np.zeros((Hp, Ho), np.float32)
    p_even[np.arange(Hp), 2 * np.arange(Hp)] = 1.0
    p_odd[np.arange(Hp), 2 * np.arange(Hp) + 1] = 1.0

    kernel = functools.partial(
        _encoder_block_kernel, n_img=N, kh=kh, ho=Ho, wp=Wp, cout=Cout,
        count=float(N * Ho * Wo), eps=eps)

    def full(shape):
        return pl.BlockSpec(shape, lambda i, _s=len(shape): (0,) * _s)

    return pl.pallas_call(
        kernel,
        out_shape=jax.ShapeDtypeStruct((N, Cout, Hp, Wp), jnp.float32),
        grid=(1,),
        in_specs=[
            full((N, H, Cin * W)),      # x rows
            full((kh, Cin * W, L)),     # Toeplitz weight (resident in VMEM)
            full((1, Cout)),            # conv bias
            full((1, Cout)),            # BN gamma
            full((1, Cout)),            # BN beta
            full((L, Cout)),            # lane -> channel
            full((Cout, L)),            # channel -> lane
            full((Hp, Ho)),             # even-row selector
            full((Hp, Ho)),             # odd-row selector
        ],
        out_specs=full((N, Cout, Hp, Wp)),
        compiler_params=pltpu.CompilerParams(
            dimension_semantics=("arbitrary",)),
    )(x_r, t_toe, b.reshape(1, Cout), gamma.reshape(1, Cout),
      beta.reshape(1, Cout), jnp.asarray(s_mat), jnp.asarray(st_mat),
      jnp.asarray(p_even), jnp.asarray(p_odd))


# ---------------------------------------------------------------------------
# Pure-JAX reference
# ---------------------------------------------------------------------------
def encoder_block_ref(x, w, b, gamma, beta, eps=1e-5):
    y = jax.lax.conv_general_dilated(
        x, w, window_strides=(1, 1), padding="VALID",
        dimension_numbers=("NCHW", "OIHW", "NCHW"))
    y = y + b.reshape(1, -1, 1, 1)
    mean = jnp.mean(y, axis=(0, 2, 3), keepdims=True)
    var = jnp.mean((y - mean) ** 2, axis=(0, 2, 3), keepdims=True)   # biased var
    y = (y - mean) * jax.lax.rsqrt(var + eps)
    y = y * gamma.reshape(1, -1, 1, 1) + beta.reshape(1, -1, 1, 1)
    y = jnp.maximum(y, 0.0)
    N, C, Ho, Wo = y.shape
    Hp, Wp = Ho // 2, Wo // 2
    y = y[:, :, :2 * Hp, :2 * Wp].reshape(N, C, Hp, 2, Wp, 2)
    return jnp.max(y, axis=(3, 5))


if __name__ == "__main__":
    # Small shapes consistent with the module: N=2, Cin=4, H=W=16, Cout=8, k=3.
    N, Cin, H, W = 2, 4, 16, 16
    Cout, k = 8, 3

    key = jax.random.PRNGKey(0)
    kx, kw_, kb, kg, kbt = jax.random.split(key, 5)
    x = jax.random.normal(kx, (N, Cin, H, W), dtype=jnp.float32)
    w = jax.random.normal(kw_, (Cout, Cin, k, k), dtype=jnp.float32) * 0.1
    b = jax.random.normal(kb, (Cout,), dtype=jnp.float32) * 0.1
    gamma = 1.0 + 0.1 * jax.random.normal(kg, (Cout,), dtype=jnp.float32)
    beta = 0.1 * jax.random.normal(kbt, (Cout,), dtype=jnp.float32)

    out = encoder_block(x, w, b, gamma, beta)
    out = jax.block_until_ready(out)

    ref = encoder_block_ref(x, w, b, gamma, beta)
    Hp, Wp = (H - k + 1) // 2, (W - k + 1) // 2
    assert out.shape == (N, Cout, Hp, Wp)
    assert jnp.allclose(out, ref, atol=1e-3, rtol=1e-3), "mismatch vs reference"

    print("KERNEL_OK")
</pallas_src>

<mosaic_0001>
module attributes {stable_mosaic.version = 11 : i64} {
  func.func @_encoder_block_kernel(%arg0: i32, %arg1: memref<2x16x64xf32, #tpu.memory_space<vmem>>, %arg2: memref<3x64x112xf32, #tpu.memory_space<vmem>>, %arg3: memref<1x8xf32, #tpu.memory_space<vmem>>, %arg4: memref<1x8xf32, #tpu.memory_space<vmem>>, %arg5: memref<1x8xf32, #tpu.memory_space<vmem>>, %arg6: memref<112x8xf32, #tpu.memory_space<vmem>>, %arg7: memref<8x112xf32, #tpu.memory_space<vmem>>, %arg8: memref<7x14xf32, #tpu.memory_space<vmem>>, %arg9: memref<7x14xf32, #tpu.memory_space<vmem>>, %arg10: memref<2x8x7x7xf32, #tpu.memory_space<vmem>>) attributes {dimension_semantics = [#tpu.dimension_semantics<arbitrary>], iteration_bounds = array<i64: 1>, scalar_prefetch = 0 : i64, scratch_operands = 0 : i64, tpu.core_type = #tpu.core_type<tc>, window_params = [{pipeline_mode = #tpu.pipeline_mode<synchronous>, transform_indices = @transform_0, window_bounds = array<i64: 2, 16, 64>}, {pipeline_mode = #tpu.pipeline_mode<synchronous>, transform_indices = @transform_1, window_bounds = array<i64: 3, 64, 112>}, {pipeline_mode = #tpu.pipeline_mode<synchronous>, transform_indices = @transform_2, window_bounds = array<i64: 1, 8>}, {pipeline_mode = #tpu.pipeline_mode<synchronous>, transform_indices = @transform_3, window_bounds = array<i64: 1, 8>}, {pipeline_mode = #tpu.pipeline_mode<synchronous>, transform_indices = @transform_4, window_bounds = array<i64: 1, 8>}, {pipeline_mode = #tpu.pipeline_mode<synchronous>, transform_indices = @transform_5, window_bounds = array<i64: 112, 8>}, {pipeline_mode = #tpu.pipeline_mode<synchronous>, transform_indices = @transform_6, window_bounds = array<i64: 8, 112>}, {pipeline_mode = #tpu.pipeline_mode<synchronous>, transform_indices = @transform_7, window_bounds = array<i64: 7, 14>}, {pipeline_mode = #tpu.pipeline_mode<synchronous>, transform_indices = @transform_8, window_bounds = array<i64: 7, 14>}, {pipeline_mode = #tpu.pipeline_mode<synchronous>, transform_indices = @transform_9, window_bounds = array<i64: 2, 8, 7, 7>}]} {
    %c0 = arith.constant 0 : index
    %c0_0 = arith.constant 0 : index
    %0 = vector.load %arg6[%c0, %c0_0] : memref<112x8xf32, #tpu.memory_space<vmem>>, vector<112x8xf32>
    %c0_1 = arith.constant 0 : index
    %c0_2 = arith.constant 0 : index
    %1 = vector.load %arg7[%c0_1, %c0_2] : memref<8x112xf32, #tpu.memory_space<vmem>>, vector<8x112xf32>
    %c0_3 = arith.constant 0 : index
    %c0_4 = arith.constant 0 : index
    %2 = vector.load %arg3[%c0_3, %c0_4] : memref<1x8xf32, #tpu.memory_space<vmem>>, vector<1x8xf32>
    %cst = arith.constant dense<0.000000e+00> : vector<1x112xf32>
    %3 = tpu.matmul %2, %1, %cst {dimension_numbers = #tpu.dot_dimension_numbers<[1], [0], [0], [1], [0, 0, 1, 1], [], []>} : vector<1x8xf32>, vector<8x112xf32>, vector<1x112xf32> -> vector<1x112xf32>
    %cst_5 = arith.constant 0.000000e+00 : f32
    %4 = vector.broadcast %cst_5 : f32 to vector<1x112xf32>
    %cst_6 = arith.constant 0.000000e+00 : f32
    %5 = vector.broadcast %cst_6 : f32 to vector<14x112xf32>
    %c0_7 = arith.constant 0 : index
    %c0_8 = arith.constant 0 : index
    %c0_9 = arith.constant 0 : index
    %6 = vector.load %arg1[%c0_7, %c0_8, %c0_9] : memref<2x16x64xf32, #tpu.memory_space<vmem>>, vector<1x14x64xf32>
    %7 = vector.shape_cast %6 : vector<1x14x64xf32> to vector<14x64xf32>
    %c0_10 = arith.constant 0 : index
    %c0_11 = arith.constant 0 : index
    %c0_12 = arith.constant 0 : index
    %8 = vector.load %arg2[%c0_10, %c0_11, %c0_12] : memref<3x64x112xf32, #tpu.memory_space<vmem>>, vector<1x64x112xf32>
    %9 = vector.shape_cast %8 : vector<1x64x112xf32> to vector<64x112xf32>
    %cst_13 = arith.constant dense<0.000000e+00> : vector<14x112xf32>
    %10 = tpu.matmul %7, %9, %cst_13 {dimension_numbers = #tpu.dot_dimension_numbers<[1], [0], [0], [1], [0, 0, 1, 1], [], []>} : vector<14x64xf32>, vector<64x112xf32>, vector<14x112xf32> -> vector<14x112xf32>
    %11 = arith.addf %5, %10 : vector<14x112xf32>
    %c0_14 = arith.constant 0 : index
    %c1 = arith.constant 1 : index
    %c0_15 = arith.constant 0 : index
    %12 = vector.load %arg1[%c0_14, %c1, %c0_15] : memref<2x16x64xf32, #tpu.memory_space<vmem>>, vector<1x14x64xf32>
    %13 = vector.shape_cast %12 : vector<1x14x64xf32> to vector<14x64xf32>
    %c1_16 = arith.constant 1 : index
    %c0_17 = arith.constant 0 : index
    %c0_18 = arith.constant 0 : index
    %14 = vector.load %arg2[%c1_16, %c0_17, %c0_18] : memref<3x64x112xf32, #tpu.memory_space<vmem>>, vector<1x64x112xf32>
    %15 = vector.shape_cast %14 : vector<1x64x112xf32> to vector<64x112xf32>
    %cst_19 = arith.constant dense<0.000000e+00> : vector<14x112xf32>
    %16 = tpu.matmul %13, %15, %cst_19 {dimension_numbers = #tpu.dot_dimension_numbers<[1], [0], [0], [1], [0, 0, 1, 1], [], []>} : vector<14x64xf32>, vector<64x112xf32>, vector<14x112xf32> -> vector<14x112xf32>
    %17 = arith.addf %11, %16 : vector<14x112xf32>
    %c0_20 = arith.constant 0 : index
    %c2 = arith.constant 2 : index
    %c0_21 = arith.constant 0 : index
    %18 = vector.load %arg1[%c0_20, %c2, %c0_21] : memref<2x16x64xf32, #tpu.memory_space<vmem>>, vector<1x14x64xf32>
    %19 = vector.shape_cast %18 : vector<1x14x64xf32> to vector<14x64xf32>
    %c2_22 = arith.constant 2 : index
    %c0_23 = arith.constant 0 : index
    %c0_24 = arith.constant 0 : index
    %20 = vector.load %arg2[%c2_22, %c0_23, %c0_24] : memref<3x64x112xf32, #tpu.memory_space<vmem>>, vector<1x64x112xf32>
    %21 = vector.shape_cast %20 : vector<1x64x112xf32> to vector<64x112xf32>
    %cst_25 = arith.constant dense<0.000000e+00> : vector<14x112xf32>
    %22 = tpu.matmul %19, %21, %cst_25 {dimension_numbers = #tpu.dot_dimension_numbers<[1], [0], [0], [1], [0, 0, 1, 1], [], []>} : vector<14x64xf32>, vector<64x112xf32>, vector<14x112xf32> -> vector<14x112xf32>
    %23 = arith.addf %17, %22 : vector<14x112xf32>
    %24 = vector.broadcast %3 : vector<1x112xf32> to vector<14x112xf32>
    %25 = arith.addf %23, %24 : vector<14x112xf32>
    %cst_26 = arith.constant dense<0.000000e+00> : vector<112xf32>
    %26 = vector.multi_reduction <add>, %25, %cst_26 [0] : vector<14x112xf32> to vector<112xf32>
    %27 = vector.shape_cast %26 : vector<112xf32> to vector<1x112xf32>
    %28 = arith.addf %4, %27 : vector<1x112xf32>
    %cst_27 = arith.constant 0.000000e+00 : f32
    %29 = vector.broadcast %cst_27 : f32 to vector<14x112xf32>
    %c1_28 = arith.constant 1 : index
    %c0_29 = arith.constant 0 : index
    %c0_30 = arith.constant 0 : index
    %30 = vector.load %arg1[%c1_28, %c0_29, %c0_30] : memref<2x16x64xf32, #tpu.memory_space<vmem>>, vector<1x14x64xf32>
    %31 = vector.shape_cast %30 : vector<1x14x64xf32> to vector<14x64xf32>
    %c0_31 = arith.constant 0 : index
    %c0_32 = arith.constant 0 : index
    %c0_33 = arith.constant 0 : index
    %32 = vector.load %arg2[%c0_31, %c0_32, %c0_33] : memref<3x64x112xf32, #tpu.memory_space<vmem>>, vector<1x64x112xf32>
    %33 = vector.shape_cast %32 : vector<1x64x112xf32> to vector<64x112xf32>
    %cst_34 = arith.constant dense<0.000000e+00> : vector<14x112xf32>
    %34 = tpu.matmul %31, %33, %cst_34 {dimension_numbers = #tpu.dot_dimension_numbers<[1], [0], [0], [1], [0, 0, 1, 1], [], []>} : vector<14x64xf32>, vector<64x112xf32>, vector<14x112xf32> -> vector<14x112xf32>
    %35 = arith.addf %29, %34 : vector<14x112xf32>
    %c1_35 = arith.constant 1 : index
    %c1_36 = arith.constant 1 : index
    %c0_37 = arith.constant 0 : index
    %36 = vector.load %arg1[%c1_35, %c1_36, %c0_37] : memref<2x16x64xf32, #tpu.memory_space<vmem>>, vector<1x14x64xf32>
    %37 = vector.shape_cast %36 : vector<1x14x64xf32> to vector<14x64xf32>
    %c1_38 = arith.constant 1 : index
    %c0_39 = arith.constant 0 : index
    %c0_40 = arith.constant 0 : index
    %38 = vector.load %arg2[%c1_38, %c0_39, %c0_40] : memref<3x64x112xf32, #tpu.memory_space<vmem>>, vector<1x64x112xf32>
    %39 = vector.shape_cast %38 : vector<1x64x112xf32> to vector<64x112xf32>
    %cst_41 = arith.constant dense<0.000000e+00> : vector<14x112xf32>
    %40 = tpu.matmul %37, %39, %cst_41 {dimension_numbers = #tpu.dot_dimension_numbers<[1], [0], [0], [1], [0, 0, 1, 1], [], []>} : vector<14x64xf32>, vector<64x112xf32>, vector<14x112xf32> -> vector<14x112xf32>
    %41 = arith.addf %35, %40 : vector<14x112xf32>
    %c1_42 = arith.constant 1 : index
    %c2_43 = arith.constant 2 : index
    %c0_44 = arith.constant 0 : index
    %42 = vector.load %arg1[%c1_42, %c2_43, %c0_44] : memref<2x16x64xf32, #tpu.memory_space<vmem>>, vector<1x14x64xf32>
    %43 = vector.shape_cast %42 : vector<1x14x64xf32> to vector<14x64xf32>
    %c2_45 = arith.constant 2 : index
    %c0_46 = arith.constant 0 : index
    %c0_47 = arith.constant 0 : index
    %44 = vector.load %arg2[%c2_45, %c0_46, %c0_47] : memref<3x64x112xf32, #tpu.memory_space<vmem>>, vector<1x64x112xf32>
    %45 = vector.shape_cast %44 : vector<1x64x112xf32> to vector<64x112xf32>
    %cst_48 = arith.constant dense<0.000000e+00> : vector<14x112xf32>
    %46 = tpu.matmul %43, %45, %cst_48 {dimension_numbers = #tpu.dot_dimension_numbers<[1], [0], [0], [1], [0, 0, 1, 1], [], []>} : vector<14x64xf32>, vector<64x112xf32>, vector<14x112xf32> -> vector<14x112xf32>
    %47 = arith.addf %41, %46 : vector<14x112xf32>
    %48 = vector.broadcast %3 : vector<1x112xf32> to vector<14x112xf32>
    %49 = arith.addf %47, %48 : vector<14x112xf32>
    %cst_49 = arith.constant dense<0.000000e+00> : vector<112xf32>
    %50 = vector.multi_reduction <add>, %49, %cst_49 [0] : vector<14x112xf32> to vector<112xf32>
    %51 = vector.shape_cast %50 : vector<112xf32> to vector<1x112xf32>
    %52 = arith.addf %28, %51 : vector<1x112xf32>
    %cst_50 = arith.constant dense<0.000000e+00> : vector<1x8xf32>
    %53 = tpu.matmul %52, %0, %cst_50 {dimension_numbers = #tpu.dot_dimension_numbers<[1], [0], [0], [1], [0, 0, 1, 1], [], []>} : vector<1x112xf32>, vector<112x8xf32>, vector<1x8xf32> -> vector<1x8xf32>
    %cst_51 = arith.constant 0.00255102036 : f32
    %54 = vector.broadcast %cst_51 : f32 to vector<1x8xf32>
    %55 = arith.mulf %53, %54 : vector<1x8xf32>
    %cst_52 = arith.constant dense<0.000000e+00> : vector<1x112xf32>
    %56 = tpu.matmul %55, %1, %cst_52 {dimension_numbers = #tpu.dot_dimension_numbers<[1], [0], [0], [1], [0, 0, 1, 1], [], []>} : vector<1x8xf32>, vector<8x112xf32>, vector<1x112xf32> -> vector<1x112xf32>
    %cst_53 = arith.constant 0.000000e+00 : f32
    %57 = vector.broadcast %cst_53 : f32 to vector<1x112xf32>
    %58 = vector.broadcast %56 : vector<1x112xf32> to vector<14x112xf32>
    %59 = arith.subf %25, %58 : vector<14x112xf32>
    %60 = arith.mulf %59, %59 : vector<14x112xf32>
    %cst_54 = arith.constant dense<0.000000e+00> : vector<112xf32>
    %61 = vector.multi_reduction <add>, %60, %cst_54 [0] : vector<14x112xf32> to vector<112xf32>
    %62 = vector.shape_cast %61 : vector<112xf32> to vector<1x112xf32>
    %63 = arith.addf %57, %62 : vector<1x112xf32>
    %64 = vector.broadcast %56 : vector<1x112xf32> to vector<14x112xf32>
    %65 = arith.subf %49, %64 : vector<14x112xf32>
    %66 = arith.mulf %65, %65 : vector<14x112xf32>
    %cst_55 = arith.constant dense<0.000000e+00> : vector<112xf32>
    %67 = vector.multi_reduction <add>, %66, %cst_55 [0] : vector<14x112xf32> to vector<112xf32>
    %68 = vector.shape_cast %67 : vector<112xf32> to vector<1x112xf32>
    %69 = arith.addf %63, %68 : vector<1x112xf32>
    %cst_56 = arith.constant dense<0.000000e+00> : vector<1x8xf32>
    %70 = tpu.matmul %69, %0, %cst_56 {dimension_numbers = #tpu.dot_dimension_numbers<[1], [0], [0], [1], [0, 0, 1, 1], [], []>} : vector<1x112xf32>, vector<112x8xf32>, vector<1x8xf32> -> vector<1x8xf32>
    %cst_57 = arith.constant 0.00255102036 : f32
    %71 = vector.broadcast %cst_57 : f32 to vector<1x8xf32>
    %72 = arith.mulf %70, %71 : vector<1x8xf32>
    %c0_58 = arith.constant 0 : index
    %c0_59 = arith.constant 0 : index
    %73 = vector.load %arg4[%c0_58, %c0_59] : memref<1x8xf32, #tpu.memory_space<vmem>>, vector<1x8xf32>
    %cst_60 = arith.constant 9.99999974E-6 : f32
    %74 = vector.broadcast %cst_60 : f32 to vector<1x8xf32>
    %75 = arith.addf %72, %74 : vector<1x8xf32>
    %76 = math.rsqrt %75 : vector<1x8xf32>
    %77 = arith.mulf %73, %76 : vector<1x8xf32>
    %c0_61 = arith.constant 0 : index
    %c0_62 = arith.constant 0 : index
    %78 = vector.load %arg5[%c0_61, %c0_62] : memref<1x8xf32, #tpu.memory_space<vmem>>, vector<1x8xf32>
    %79 = arith.mulf %55, %77 : vector<1x8xf32>
    %80 = arith.subf %78, %79 : vector<1x8xf32>
    %cst_63 = arith.constant dense<0.000000e+00> : vector<1x112xf32>
    %81 = tpu.matmul %77, %1, %cst_63 {dimension_numbers = #tpu.dot_dimension_numbers<[1], [0], [0], [1], [0, 0, 1, 1], [], []>} : vector<1x8xf32>, vector<8x112xf32>, vector<1x112xf32> -> vector<1x112xf32>
    %cst_64 = arith.constant dense<0.000000e+00> : vector<1x112xf32>
    %82 = tpu.matmul %80, %1, %cst_64 {dimension_numbers = #tpu.dot_dimension_numbers<[1], [0], [0], [1], [0, 0, 1, 1], [], []>} : vector<1x8xf32>, vector<8x112xf32>, vector<1x112xf32> -> vector<1x112xf32>
    %c0_65 = arith.constant 0 : index
    %c0_66 = arith.constant 0 : index
    %83 = vector.load %arg8[%c0_65, %c0_66] : memref<7x14xf32, #tpu.memory_space<vmem>>, vector<7x14xf32>
    %c0_67 = arith.constant 0 : index
    %c0_68 = arith.constant 0 : index
    %84 = vector.load %arg9[%c0_67, %c0_68] : memref<7x14xf32, #tpu.memory_space<vmem>>, vector<7x14xf32>
    %85 = vector.broadcast %81 : vector<1x112xf32> to vector<14x112xf32>
    %86 = arith.mulf %25, %85 : vector<14x112xf32>
    %87 = vector.broadcast %82 : vector<1x112xf32> to vector<14x112xf32>
    %88 = arith.addf %86, %87 : vector<14x112xf32>
    %cst_69 = arith.constant 0.000000e+00 : f32
    %89 = vector.broadcast %cst_69 : f32 to vector<14x112xf32>
    %90 = arith.maximumf %88, %89 : vector<14x112xf32>
    %cst_70 = arith.constant dense<0.000000e+00> : vector<7x112xf32>
    %91 = tpu.matmul %83, %90, %cst_70 {dimension_numbers = #tpu.dot_dimension_numbers<[1], [0], [0], [1], [0, 0, 1, 1], [], []>} : vector<7x14xf32>, vector<14x112xf32>, vector<7x112xf32> -> vector<7x112xf32>
    %cst_71 = arith.constant dense<0.000000e+00> : vector<7x112xf32>
    %92 = tpu.matmul %84, %90, %cst_71 {dimension_numbers = #tpu.dot_dimension_numbers<[1], [0], [0], [1], [0, 0, 1, 1], [], []>} : vector<7x14xf32>, vector<14x112xf32>, vector<7x112xf32> -> vector<7x112xf32>
    %93 = arith.maximumf %91, %92 : vector<7x112xf32>
    %94 = vector.extract_strided_slice %93 {offsets = [0, 0], sizes = [7, 56], strides = [1, 1]} : vector<7x112xf32> to vector<7x56xf32>
    %95 = vector.extract_strided_slice %93 {offsets = [0, 56], sizes = [7, 56], strides = [1, 1]} : vector<7x112xf32> to vector<7x56xf32>
    %96 = arith.maximumf %94, %95 : vector<7x56xf32>
    %97 = vector.extract_strided_slice %96 {offsets = [0, 0], sizes = [7, 7], strides = [1, 1]} : vector<7x56xf32> to vector<7x7xf32>
    %c0_72 = arith.constant 0 : index
    %c0_73 = arith.constant 0 : index
    %c0_74 = arith.constant 0 : index
    %c0_75 = arith.constant 0 : index
    %98 = vector.load %arg10[%c0_72, %c0_73, %c0_74, %c0_75] : memref<2x8x7x7xf32, #tpu.memory_space<vmem>>, vector<1x1x7x7xf32>
    %99 = vector.shape_cast %98 : vector<1x1x7x7xf32> to vector<7x7xf32>
    %100 = vector.shape_cast %97 : vector<7x7xf32> to vector<1x1x7x7xf32>
    tpu.vector_store %arg10[%c0_72, %c0_73, %c0_74, %c0_75], %100 {strides = array<i32>} : memref<2x8x7x7xf32, #tpu.memory_space<vmem>>, vector<1x1x7x7xf32>,
    %101 = vector.extract_strided_slice %96 {offsets = [0, 7], sizes = [7, 7], strides = [1, 1]} : vector<7x56xf32> to vector<7x7xf32>
    %c0_76 = arith.constant 0 : index
    %c1_77 = arith.constant 1 : index
    %c0_78 = arith.constant 0 : index
    %c0_79 = arith.constant 0 : index
    %102 = vector.load %arg10[%c0_76, %c1_77, %c0_78, %c0_79] : memref<2x8x7x7xf32, #tpu.memory_space<vmem>>, vector<1x1x7x7xf32>
    %103 = vector.shape_cast %102 : vector<1x1x7x7xf32> to vector<7x7xf32>
    %104 = vector.shape_cast %101 : vector<7x7xf32> to vector<1x1x7x7xf32>
    tpu.vector_store %arg10[%c0_76, %c1_77, %c0_78, %c0_79], %104 {strides = array<i32>} : memref<2x8x7x7xf32, #tpu.memory_space<vmem>>, vector<1x1x7x7xf32>,
    %105 = vector.extract_strided_slice %96 {offsets = [0, 14], sizes = [7, 7], strides = [1, 1]} : vector<7x56xf32> to vector<7x7xf32>
    %c0_80 = arith.constant 0 : index
    %c2_81 = arith.constant 2 : index
    %c0_82 = arith.constant 0 : index
    %c0_83 = arith.constant 0 : index
    %106 = vector.load %arg10[%c0_80, %c2_81, %c0_82, %c0_83] : memref<2x8x7x7xf32, #tpu.memory_space<vmem>>, vector<1x1x7x7xf32>
    %107 = vector.shape_cast %106 : vector<1x1x7x7xf32> to vector<7x7xf32>
    %108 = vector.shape_cast %105 : vector<7x7xf32> to vector<1x1x7x7xf32>
    tpu.vector_store %arg10[%c0_80, %c2_81, %c0_82, %c0_83], %108 {strides = array<i32>} : memref<2x8x7x7xf32, #tpu.memory_space<vmem>>, vector<1x1x7x7xf32>,
    %109 = vector.extract_strided_slice %96 {offsets = [0, 21], sizes = [7, 7], strides = [1, 1]} : vector<7x56xf32> to vector<7x7xf32>
    %c0_84 = arith.constant 0 : index
    %c3 = arith.constant 3 : index
    %c0_85 = arith.constant 0 : index
    %c0_86 = arith.constant 0 : index
    %110 = vector.load %arg10[%c0_84, %c3, %c0_85, %c0_86] : memref<2x8x7x7xf32, #tpu.memory_space<vmem>>, vector<1x1x7x7xf32>
    %111 = vector.shape_cast %110 : vector<1x1x7x7xf32> to vector<7x7xf32>
    %112 = vector.shape_cast %109 : vector<7x7xf32> to vector<1x1x7x7xf32>
    tpu.vector_store %arg10[%c0_84, %c3, %c0_85, %c0_86], %112 {strides = array<i32>} : memref<2x8x7x7xf32, #tpu.memory_space<vmem>>, vector<1x1x7x7xf32>,
    %113 = vector.extract_strided_slice %96 {offsets = [0, 28], sizes = [7, 7], strides = [1, 1]} : vector<7x56xf32> to vector<7x7xf32>
    %c0_87 = arith.constant 0 : index
    %c4 = arith.constant 4 : index
    %c0_88 = arith.constant 0 : index
    %c0_89 = arith.constant 0 : index
    %114 = vector.load %arg10[%c0_87, %c4, %c0_88, %c0_89] : memref<2x8x7x7xf32, #tpu.memory_space<vmem>>, vector<1x1x7x7xf32>
    %115 = vector.shape_cast %114 : vector<1x1x7x7xf32> to vector<7x7xf32>
    %116 = vector.shape_cast %113 : vector<7x7xf32> to vector<1x1x7x7xf32>
    tpu.vector_store %arg10[%c0_87, %c4, %c0_88, %c0_89], %116 {strides = array<i32>} : memref<2x8x7x7xf32, #tpu.memory_space<vmem>>, vector<1x1x7x7xf32>,
    %117 = vector.extract_strided_slice %96 {offsets = [0, 35], sizes = [7, 7], strides = [1, 1]} : vector<7x56xf32> to vector<7x7xf32>
    %c0_90 = arith.constant 0 : index
    %c5 = arith.constant 5 : index
    %c0_91 = arith.constant 0 : index
    %c0_92 = arith.constant 0 : index
    %118 = vector.load %arg10[%c0_90, %c5, %c0_91, %c0_92] : memref<2x8x7x7xf32, #tpu.memory_space<vmem>>, vector<1x1x7x7xf32>
    %119 = vector.shape_cast %118 : vector<1x1x7x7xf32> to vector<7x7xf32>
    %120 = vector.shape_cast %117 : vector<7x7xf32> to vector<1x1x7x7xf32>
    tpu.vector_store %arg10[%c0_90, %c5, %c0_91, %c0_92], %120 {strides = array<i32>} : memref<2x8x7x7xf32, #tpu.memory_space<vmem>>, vector<1x1x7x7xf32>,
    %121 = vector.extract_strided_slice %96 {offsets = [0, 42], sizes = [7, 7], strides = [1, 1]} : vector<7x56xf32> to vector<7x7xf32>
    %c0_93 = arith.constant 0 : index
    %c6 = arith.constant 6 : index
    %c0_94 = arith.constant 0 : index
    %c0_95 = arith.constant 0 : index
    %122 = vector.load %arg10[%c0_93, %c6, %c0_94, %c0_95] : memref<2x8x7x7xf32, #tpu.memory_space<vmem>>, vector<1x1x7x7xf32>
    %123 = vector.shape_cast %122 : vector<1x1x7x7xf32> to vector<7x7xf32>
    %124 = vector.shape_cast %121 : vector<7x7xf32> to vector<1x1x7x7xf32>
    tpu.vector_store %arg10[%c0_93, %c6, %c0_94, %c0_95], %124 {strides = array<i32>} : memref<2x8x7x7xf32, #tpu.memory_space<vmem>>, vector<1x1x7x7xf32>,
    %125 = vector.extract_strided_slice %96 {offsets = [0, 49], sizes = [7, 7], strides = [1, 1]} : vector<7x56xf32> to vector<7x7xf32>
    %c0_96 = arith.constant 0 : index
    %c7 = arith.constant 7 : index
    %c0_97 = arith.constant 0 : index
    %c0_98 = arith.constant 0 : index
    %126 = vector.load %arg10[%c0_96, %c7, %c0_97, %c0_98] : memref<2x8x7x7xf32, #tpu.memory_space<vmem>>, vector<1x1x7x7xf32>
    %127 = vector.shape_cast %126 : vector<1x1x7x7xf32> to vector<7x7xf32>
    %128 = vector.shape_cast %125 : vector<7x7xf32> to vector<1x1x7x7xf32>
    tpu.vector_store %arg10[%c0_96, %c7, %c0_97, %c0_98], %128 {strides = array<i32>} : memref<2x8x7x7xf32, #tpu.memory_space<vmem>>, vector<1x1x7x7xf32>,
    %129 = vector.broadcast %81 : vector<1x112xf32> to vector<14x112xf32>
    %130 = arith.mulf %49, %129 : vector<14x112xf32>
    %131 = vector.broadcast %82 : vector<1x112xf32> to vector<14x112xf32>
    %132 = arith.addf %130, %131 : vector<14x112xf32>
    %cst_99 = arith.constant 0.000000e+00 : f32
    %133 = vector.broadcast %cst_99 : f32 to vector<14x112xf32>
    %134 = arith.maximumf %132, %133 : vector<14x112xf32>
    %cst_100 = arith.constant dense<0.000000e+00> : vector<7x112xf32>
    %135 = tpu.matmul %83, %134, %cst_100 {dimension_numbers = #tpu.dot_dimension_numbers<[1], [0], [0], [1], [0, 0, 1, 1], [], []>} : vector<7x14xf32>, vector<14x112xf32>, vector<7x112xf32> -> vector<7x112xf32>
    %cst_101 = arith.constant dense<0.000000e+00> : vector<7x112xf32>
    %136 = tpu.matmul %84, %134, %cst_101 {dimension_numbers = #tpu.dot_dimension_numbers<[1], [0], [0], [1], [0, 0, 1, 1], [], []>} : vector<7x14xf32>, vector<14x112xf32>, vector<7x112xf32> -> vector<7x112xf32>
    %137 = arith.maximumf %135, %136 : vector<7x112xf32>
    %138 = vector.extract_strided_slice %137 {offsets = [0, 0], sizes = [7, 56], strides = [1, 1]} : vector<7x112xf32> to vector<7x56xf32>
    %139 = vector.extract_strided_slice %137 {offsets = [0, 56], sizes = [7, 56], strides = [1, 1]} : vector<7x112xf32> to vector<7x56xf32>
    %140 = arith.maximumf %138, %139 : vector<7x56xf32>
    %141 = vector.extract_strided_slice %140 {offsets = [0, 0], sizes = [7, 7], strides = [1, 1]} : vector<7x56xf32> to vector<7x7xf32>
    %c1_102 = arith.constant 1 : index
    %c0_103 = arith.constant 0 : index
    %c0_104 = arith.constant 0 : index
    %c0_105 = arith.constant 0 : index
    %142 = vector.load %arg10[%c1_102, %c0_103, %c0_104, %c0_105] : memref<2x8x7x7xf32, #tpu.memory_space<vmem>>, vector<1x1x7x7xf32>
    %143 = vector.shape_cast %142 : vector<1x1x7x7xf32> to vector<7x7xf32>
    %144 = vector.shape_cast %141 : vector<7x7xf32> to vector<1x1x7x7xf32>
    tpu.vector_store %arg10[%c1_102, %c0_103, %c0_104, %c0_105], %144 {strides = array<i32>} : memref<2x8x7x7xf32, #tpu.memory_space<vmem>>, vector<1x1x7x7xf32>,
    %145 = vector.extract_strided_slice %140 {offsets = [0, 7], sizes = [7, 7], strides = [1, 1]} : vector<7x56xf32> to vector<7x7xf32>
    %c1_106 = arith.constant 1 : index
    %c1_107 = arith.constant 1 : index
    %c0_108 = arith.constant 0 : index
    %c0_109 = arith.constant 0 : index
    %146 = vector.load %arg10[%c1_106, %c1_107, %c0_108, %c0_109] : memref<2x8x7x7xf32, #tpu.memory_space<vmem>>, vector<1x1x7x7xf32>
    %147 = vector.shape_cast %146 : vector<1x1x7x7xf32> to vector<7x7xf32>
    %148 = vector.shape_cast %145 : vector<7x7xf32> to vector<1x1x7x7xf32>
    tpu.vector_store %arg10[%c1_106, %c1_107, %c0_108, %c0_109], %148 {strides = array<i32>} : memref<2x8x7x7xf32, #tpu.memory_space<vmem>>, vector<1x1x7x7xf32>,
    %149 = vector.extract_strided_slice %140 {offsets = [0, 14], sizes = [7, 7], strides = [1, 1]} : vector<7x56xf32> to vector<7x7xf32>
    %c1_110 = arith.constant 1 : index
    %c2_111 = arith.constant 2 : index
    %c0_112 = arith.constant 0 : index
    %c0_113 = arith.constant 0 : index
    %150 = vector.load %arg10[%c1_110, %c2_111, %c0_112, %c0_113] : memref<2x8x7x7xf32, #tpu.memory_space<vmem>>, vector<1x1x7x7xf32>
    %151 = vector.shape_cast %150 : vector<1x1x7x7xf32> to vector<7x7xf32>
    %152 = vector.shape_cast %149 : vector<7x7xf32> to vector<1x1x7x7xf32>
    tpu.vector_store %arg10[%c1_110, %c2_111, %c0_112, %c0_113], %152 {strides = array<i32>} : memref<2x8x7x7xf32, #tpu.memory_space<vmem>>, vector<1x1x7x7xf32>,
    %153 = vector.extract_strided_slice %140 {offsets = [0, 21], sizes = [7, 7], strides = [1, 1]} : vector<7x56xf32> to vector<7x7xf32>
    %c1_114 = arith.constant 1 : index
    %c3_115 = arith.constant 3 : index
    %c0_116 = arith.constant 0 : index
    %c0_117 = arith.constant 0 : index
    %154 = vector.load %arg10[%c1_114, %c3_115, %c0_116, %c0_117] : memref<2x8x7x7xf32, #tpu.memory_space<vmem>>, vector<1x1x7x7xf32>
    %155 = vector.shape_cast %154 : vector<1x1x7x7xf32> to vector<7x7xf32>
    %156 = vector.shape_cast %153 : vector<7x7xf32> to vector<1x1x7x7xf32>
    tpu.vector_store %arg10[%c1_114, %c3_115, %c0_116, %c0_117], %156 {strides = array<i32>} : memref<2x8x7x7xf32, #tpu.memory_space<vmem>>, vector<1x1x7x7xf32>,
    %157 = vector.extract_strided_slice %140 {offsets = [0, 28], sizes = [7, 7], strides = [1, 1]} : vector<7x56xf32> to vector<7x7xf32>
    %c1_118 = arith.constant 1 : index
    %c4_119 = arith.constant 4 : index
    %c0_120 = arith.constant 0 : index
    %c0_121 = arith.constant 0 : index
    %158 = vector.load %arg10[%c1_118, %c4_119, %c0_120, %c0_121] : memref<2x8x7x7xf32, #tpu.memory_space<vmem>>, vector<1x1x7x7xf32>
    %159 = vector.shape_cast %158 : vector<1x1x7x7xf32> to vector<7x7xf32>
    %160 = vector.shape_cast %157 : vector<7x7xf32> to vector<1x1x7x7xf32>
    tpu.vector_store %arg10[%c1_118, %c4_119, %c0_120, %c0_121], %160 {strides = array<i32>} : memref<2x8x7x7xf32, #tpu.memory_space<vmem>>, vector<1x1x7x7xf32>,
    %161 = vector.extract_strided_slice %140 {offsets = [0, 35], sizes = [7, 7], strides = [1, 1]} : vector<7x56xf32> to vector<7x7xf32>
    %c1_122 = arith.constant 1 : index
    %c5_123 = arith.constant 5 : index
    %c0_124 = arith.constant 0 : index
    %c0_125 = arith.constant 0 : index
    %162 = vector.load %arg10[%c1_122, %c5_123, %c0_124, %c0_125] : memref<2x8x7x7xf32, #tpu.memory_space<vmem>>, vector<1x1x7x7xf32>
    %163 = vector.shape_cast %162 : vector<1x1x7x7xf32> to vector<7x7xf32>
    %164 = vector.shape_cast %161 : vector<7x7xf32> to vector<1x1x7x7xf32>
    tpu.vector_store %arg10[%c1_122, %c5_123, %c0_124, %c0_125], %164 {strides = array<i32>} : memref<2x8x7x7xf32, #tpu.memory_space<vmem>>, vector<1x1x7x7xf32>,
    %165 = vector.extract_strided_slice %140 {offsets = [0, 42], sizes = [7, 7], strides = [1, 1]} : vector<7x56xf32> to vector<7x7xf32>
    %c1_126 = arith.constant 1 : index
    %c6_127 = arith.constant 6 : index
    %c0_128 = arith.constant 0 : index
    %c0_129 = arith.constant 0 : index
    %166 = vector.load %arg10[%c1_126, %c6_127, %c0_128, %c0_129] : memref<2x8x7x7xf32, #tpu.memory_space<vmem>>, vector<1x1x7x7xf32>
    %167 = vector.shape_cast %166 : vector<1x1x7x7xf32> to vector<7x7xf32>
    %168 = vector.shape_cast %165 : vector<7x7xf32> to vector<1x1x7x7xf32>
    tpu.vector_store %arg10[%c1_126, %c6_127, %c0_128, %c0_129], %168 {strides = array<i32>} : memref<2x8x7x7xf32, #tpu.memory_space<vmem>>, vector<1x1x7x7xf32>,
    %169 = vector.extract_strided_slice %140 {offsets = [0, 49], sizes = [7, 7], strides = [1, 1]} : vector<7x56xf32> to vector<7x7xf32>
    %c1_130 = arith.constant 1 : index
    %c7_131 = arith.constant 7 : index
    %c0_132 = arith.constant 0 : index
    %c0_133 = arith.constant 0 : index
    %170 = vector.load %arg10[%c1_130, %c7_131, %c0_132, %c0_133] : memref<2x8x7x7xf32, #tpu.memory_space<vmem>>, vector<1x1x7x7xf32>
    %171 = vector.shape_cast %170 : vector<1x1x7x7xf32> to vector<7x7xf32>
    %172 = vector.shape_cast %169 : vector<7x7xf32> to vector<1x1x7x7xf32>
    tpu.vector_store %arg10[%c1_130, %c7_131, %c0_132, %c0_133], %172 {strides = array<i32>} : memref<2x8x7x7xf32, #tpu.memory_space<vmem>>, vector<1x1x7x7xf32>,
    return
  }
  func.func @transform_0(%arg0: i32) -> (i32, i32, i32) {
    %c0_i32 = arith.constant 0 : i32
    %c0_i32_0 = arith.constant 0 : i32
    %c0_i32_1 = arith.constant 0 : i32
    %c0_i32_2 = arith.constant 0 : i32
    return %c0_i32, %c0_i32_0, %c0_i32_1 : i32, i32, i32
  }
  func.func @transform_1(%arg0: i32) -> (i32, i32, i32) {
    %c0_i32 = arith.constant 0 : i32
    %c0_i32_0 = arith.constant 0 : i32
    %c0_i32_1 = arith.constant 0 : i32
    %c0_i32_2 = arith.constant 0 : i32
    return %c0_i32, %c0_i32_0, %c0_i32_1 : i32, i32, i32
  }
  func.func @transform_2(%arg0: i32) -> (i32, i32) {
    %c0_i32 = arith.constant 0 : i32
    %c0_i32_0 = arith.constant 0 : i32
    %c0_i32_1 = arith.constant 0 : i32
    return %c0_i32, %c0_i32_0 : i32, i32
  }
  func.func @transform_3(%arg0: i32) -> (i32, i32) {
    %c0_i32 = arith.constant 0 : i32
    %c0_i32_0 = arith.constant 0 : i32
    %c0_i32_1 = arith.constant 0 : i32
    return %c0_i32, %c0_i32_0 : i32, i32
  }
  func.func @transform_4(%arg0: i32) -> (i32, i32) {
    %c0_i32 = arith.constant 0 : i32
    %c0_i32_0 = arith.constant 0 : i32
    %c0_i32_1 = arith.constant 0 : i32
    return %c0_i32, %c0_i32_0 : i32, i32
  }
  func.func @transform_5(%arg0: i32) -> (i32, i32) {
    %c0_i32 = arith.constant 0 : i32
    %c0_i32_0 = arith.constant 0 : i32
    %c0_i32_1 = arith.constant 0 : i32
    return %c0_i32, %c0_i32_0 : i32, i32
  }
  func.func @transform_6(%arg0: i32) -> (i32, i32) {
    %c0_i32 = arith.constant 0 : i32
    %c0_i32_0 = arith.constant 0 : i32
    %c0_i32_1 = arith.constant 0 : i32
    return %c0_i32, %c0_i32_0 : i32, i32
  }
  func.func @transform_7(%arg0: i32) -> (i32, i32) {
    %c0_i32 = arith.constant 0 : i32
    %c0_i32_0 = arith.constant 0 : i32
    %c0_i32_1 = arith.constant 0 : i32
    return %c0_i32, %c0_i32_0 : i32, i32
  }
  func.func @transform_8(%arg0: i32) -> (i32, i32) {
    %c0_i32 = arith.constant 0 : i32
    %c0_i32_0 = arith.constant 0 : i32
    %c0_i32_1 = arith.constant 0 : i32
    return %c0_i32, %c0_i32_0 : i32, i32
  }
  func.func @transform_9(%arg0: i32) -> (i32, i32, i32, i32) {
    %c0_i32 = arith.constant 0 : i32
    %c0_i32_0 = arith.constant 0 : i32
    %c0_i32_1 = arith.constant 0 : i32
    %c0_i32_2 = arith.constant 0 : i32
    %c0_i32_3 = arith.constant 0 : i32
    return %c0_i32, %c0_i32_0, %c0_i32_1, %c0_i32_2 : i32, i32, i32, i32
  }
}

</mosaic_0001>

<bundles_post_ra>
// kernel: encoder_block.1
= control target key start
LH: loop header
LB: loop body
LE: loop exit
PB: predicated region body
PF: predicated region fallthrough
CT: control target
= control target key end

     0   :  { %vm93_vm0 = vcmask 523264   ;;  %vm48_vm1 = vcmask 64512   ;;  %vm199_vm2 = vcmask 914432   ;;  %vm197_vm3 = vcmask 916480   ;;  %s755_s24 = smov 93   ;;  %s756_s25 = smov 107   ;;  %s1116_s1 = inlined_call_operand.vmem [shape: f32[3,64,112], index: 1, kind: input, shape index: {}]   ;;  %s1117_s6 = inlined_call_operand.vmem [shape: f32[8,112], index: 6, kind: input, shape index: {}]   ;;  %s1118_s0 = inlined_call_operand.vmem [shape: f32[2,16,64], index: 0, kind: input, shape index: {}]   ;;  %s1119_s2 = inlined_call_operand.vmem [shape: f32[1,8], index: 2, kind: input, shape index: {}]   ;;  %s1120_s5 = inlined_call_operand.vmem [shape: f32[112,8], index: 5, kind: input, shape index: {}]   ;;  %s1121_s3 = inlined_call_operand.vmem [shape: f32[1,8], index: 3, kind: input, shape index: {}]   ;;  %s1122_s4 = inlined_call_operand.vmem [shape: f32[1,8], index: 4, kind: input, shape index: {}]   ;;  %s1123_s8 = inlined_call_operand.vmem [shape: f32[7,14], index: 8, kind: input, shape index: {}]   ;;  %s1124_s7 = inlined_call_operand.vmem [shape: f32[7,14], index: 7, kind: input, shape index: {}]   ;;  %s1125_s9 = inlined_call_operand.vmem [shape: f32[2,8,7,7], index: 9, kind: output, shape index: {}]  }
   0x1   :  { %v815_v0 = vld [vmem:[%s1116_s1 + $0x38] sm:$0xff]  ;;  %v820_v1 = vld [vmem:[%s1116_s1 + $0x30] sm:$0xff]  ;;  %v835_v5 = vld [vmem:[%s1116_s1 + $0x28] sm:$0xff]  ;;  %vm493_vm7 = vcmask 1045504   ;;  %vm489_vm8 = vcmask 113664   ;;  %vm546_vm9 = vcmask 55296  }
   0x2   :  { %v701_v2 = vld [vmem:[%s1116_s1 + $0xb8] sm:$0xff]  ;;  %137 = vmatpush.msra.mxu2 %v815_v0  ;;  %v700_v4 = vld [vmem:[%s1116_s1 + $0xb0] sm:$0xff]  ;;  %v699_v7 = vld [vmem:[%s1116_s1 + $0xa8] sm:$0xff]  ;;  %s757_s26 = smov 121   ;;  %s758_s29 = smov 100  }
   0x3   :  { %177 = vmatpush.msra.mxu3 %v701_v2  ;;  %v689_v3 = vld [vmem:[%s1116_s1 + $0x78] sm:$0xff]  ;;  %v688_v6 = vld [vmem:[%s1116_s1 + $0x70] sm:$0xff]  ;;  %v687_v8 = vld [vmem:[%s1116_s1 + $0x68] sm:$0xff]  ;;  %s760_s30 = smov 79   ;;  %s761_s10 = smov 86  }
   0x4   :  { %108 = vmatpush.msra.mxu1 %v689_v3  ;;  %138 = vmatpush.msra.mxu2 %v820_v1  ;;  %v850_v9 = vld [vmem:[%s1116_s1 + $0x20] sm:$0xff]  ;;  %v77_v12 = vld [vmem:[%s1116_s1 + $0x18] sm:$0xff]  ;;  %v76_v15 = vld [vmem:[%s1116_s1 + $0x10] sm:$0xff] }
   0x5   :  { %178 = vmatpush.msra.mxu3 %v700_v4  ;;  %v698_v10 = vld [vmem:[%s1116_s1 + $0xa0] sm:$0xff]  ;;  %v697_v13 = vld [vmem:[%s1116_s1 + $0x98] sm:$0xff]  ;;  %v696_v16 = vld [vmem:[%s1116_s1 + $0x90] sm:$0xff] }
   0x6   :  { %109 = vmatpush.msra.mxu1 %v688_v6  ;;  %139 = vmatpush.msra.mxu2 %v835_v5  ;;  %v686_v11 = vld [vmem:[%s1116_s1 + $0x60] sm:$0xff]  ;;  %v685_v14 = vld [vmem:[%s1116_s1 + $0x58] sm:$0xff]  ;;  %v684_v18 = vld [vmem:[%s1116_s1 + $0x50] sm:$0xff] }
   0x7   :  { %179 = vmatpush.msra.mxu3 %v699_v7  ;;  %v878_v17 = vld [vmem:[%s1117_s6] sm:$0xff]  ;;  %v75_v19 = vld [vmem:[%s1116_s1 + $0x8] sm:$0xff]  ;;  %v712_v32 = vld [vmem:[%s1118_s0 + $0x12] sm:$0xff]  ;;  %s759_s6 = smov 114  }
   0x8   :  { %110 = vmatpush.msra.mxu1 %v687_v8  ;;  %140 = vmatpush.msra.mxu2 %v850_v9  ;;  %v695_v20 = vld [vmem:[%s1116_s1 + $0x88] sm:$0xff]  ;;  %v74_v22 = vld [vmem:[%s1116_s1] sm:$0xff]  ;;  %v706_v33 = vld [vmem:[%s1118_s0 + $0x11] sm:$0xff] }
   0x9   :  { %180 = vmatpush.msra.mxu3 %v698_v10  ;;  %67 = vmatpush.msra.mxu0 %v878_v17  ;;  %v683_v21 = vld [vmem:[%s1116_s1 + $0x48] sm:$0xff]  ;;  %v694_v23 = vld [vmem:[%s1116_s1 + $0x80] sm:$0xff]  ;;  %v704_v34 = vld [vmem:[%s1118_s0 + $0x10] sm:$0xff] }
   0xa   :  { %111 = vmatpush.msra.mxu1 %v686_v11  ;;  %141 = vmatpush.msra.mxu2 %v77_v12  ;;  %v72_v24 = vld [vmem:[%s1118_s0] sm:$0xff]  ;;  %v73_v29 = vld [vmem:[%s1118_s0 + $0x8] sm:$0x3f]  ;;  %v713_v35 = vld [vmem:[%s1118_s0 + $0x1a] sm:$0x3f] }
   0xb   :  { %181 = vmatpush.msra.mxu3 %v697_v13  ;;  %228 = vmatpush.msrb.mxu0 %v689_v3  ;;  %v152_v25 = vld [vmem:[%s1118_s0 + $0x2] sm:$0xff]  ;;  %v47_v28 = vld [vmem:[%s1119_s2] sm:$0x1]  ;;  %v153_v30 = vld [vmem:[%s1118_s0 + $0xa] sm:$0x3f] }
   0xc   :  { %112 = vmatpush.msra.mxu1 %v685_v14  ;;  %142 = vmatpush.msra.mxu2 %v76_v15  ;;  %v682_v26 = vld [vmem:[%s1116_s1 + $0x40] sm:$0xff]  ;;  %v83_v31 = vld [vmem:[%s1118_s0 + $0x9] sm:$0x3f]  ;;  %v707_v36 = vld [vmem:[%s1118_s0 + $0x19] sm:$0x3f] }
   0xd   :  { %182 = vmatpush.msra.mxu3 %v696_v16  ;;  %229 = vmatpush.msrb.mxu0 %v688_v6  ;;  %v82_v27 = vld [vmem:[%s1118_s0 + $0x1] sm:$0xff]  ;;  %v705_v37 = vld [vmem:[%s1118_s0 + $0x18] sm:$0x3f]  ;;  %v42_v41 = vld [vmem:[%s1120_s5 + $0x50] sm:$0xff] }
   0xe   :  { %113 = vmatpush.msra.mxu1 %v684_v18  ;;  %143 = vmatpush.msra.mxu2 %v75_v19  ;;  %v45_v38 = vld [vmem:[%s1120_s5 + $0x68] sm:$0xff]  ;;  %v44_v39 = vld [vmem:[%s1120_s5 + $0x60] sm:$0xff]  ;;  %v43_v40 = vld [vmem:[%s1120_s5 + $0x58] sm:$0xff] }
   0xf   :  { %183 = vmatpush.msra.mxu3 %v695_v20  ;;  %681 = vmatmul.msk.f32.vlgmr.msra.gmra.mxu0 %vm48_vm1, %v47_v28  ;;  %v41_v42 = vld [vmem:[%s1120_s5 + $0x48] sm:$0xff]  ;;  %v40_v44 = vld [vmem:[%s1120_s5 + $0x40] sm:$0xff]  ;;  %v39_v45 = vld [vmem:[%s1120_s5 + $0x38] sm:$0xff] }
  0x10   :  { %114 = vmatpush.msra.mxu1 %v683_v21  ;;  %144 = vmatpush.msra.mxu2 %v74_v22  ;;  %v38_v48 = vld [vmem:[%s1120_s5 + $0x30] sm:$0xff]  ;;  %v37_v49 = vld [vmem:[%s1120_s5 + $0x28] sm:$0xff]  ;;  %v36_v52 = vld [vmem:[%s1120_s5 + $0x20] sm:$0xff] }
  0x11   :  { %184 = vmatpush.msra.mxu3 %v694_v23  ;;  %692 = vmatmul.msk.f32.vlgmr.msra.gmra.mxu2 %vm93_vm0, %v72_v24  ;;  %v35_v53 = vld [vmem:[%s1120_s5 + $0x18] sm:$0xff]  ;;  %v34_v55 = vld [vmem:[%s1120_s5 + $0x10] sm:$0xff]  ;;  %v33_v58 = vld [vmem:[%s1120_s5 + $0x8] sm:$0xff] }
  0x12   :  { %702 = vmatmul.msk.f32.vlgmr.msra.gmra.mxu3 %vm93_vm0, %v152_v25  ;;  %288 = vmatpush.msrb.mxu2 %v701_v2  ;;  %v32_v62 = vld [vmem:[%s1120_s5] sm:$0xff] }
  0x13   :  { %115 = vmatpush.msra.mxu1 %v682_v26  ;;  %230 = vmatpush.msrb.mxu0 %v687_v8 }
  0x14   :  { %690 = vmatmul.msk.f32.vlgmr.msra.gmra.mxu1 %vm93_vm0, %v82_v27  ;;  %289 = vmatpush.msrb.mxu2 %v700_v4 }
  0x15   :  { %257 = vmatpush.msrb.mxu1 %v815_v0  ;;  %231 = vmatpush.msrb.mxu0 %v686_v11 }
  0x16   :  { %290 = vmatpush.msrb.mxu2 %v699_v7  ;;  %322 = vmatpush.msrb.mxu3 %v45_v38 }
  0x17   :  { %258 = vmatpush.msrb.mxu1 %v820_v1  ;;  %232 = vmatpush.msrb.mxu0 %v685_v14 }
  0x18   :  { %291 = vmatpush.msrb.mxu2 %v698_v10  ;;  %323 = vmatpush.msrb.mxu3 %v44_v39 }
  0x19   :  { %259 = vmatpush.msrb.mxu1 %v835_v5  ;;  %693 = vmatmul.msk.f32.gmra.mxu2 %vm93_vm0, %v73_v29 }
  0x1a   :  { %703 = vmatmul.msk.f32.gmra.mxu3 %vm93_vm0, %v153_v30  ;;  %292 = vmatpush.msrb.mxu2 %v697_v13 }
  0x1b   :  { %260 = vmatpush.msrb.mxu1 %v850_v9  ;;  %233 = vmatpush.msrb.mxu0 %v684_v18 }
  0x1c   :  { %691 = vmatmul.msk.f32.gmra.mxu1 %vm93_vm0, %v83_v31  ;;  %293 = vmatpush.msrb.mxu2 %v696_v16 }
  0x1d   :  { %261 = vmatpush.msrb.mxu1 %v77_v12  ;;  %234 = vmatpush.msrb.mxu0 %v683_v21 }
  0x1e   :  { %294 = vmatpush.msrb.mxu2 %v695_v20  ;;  %324 = vmatpush.msrb.mxu3 %v43_v40 }
  0x1f   :  { %262 = vmatpush.msrb.mxu1 %v76_v15  ;;  %235 = vmatpush.msrb.mxu0 %v682_v26 }
  0x20   :  { %295 = vmatpush.msrb.mxu2 %v694_v23  ;;  %708 = vmatmul.msk.f32.vlgmr.msrb.gmra.mxu0 %vm93_vm0, %v706_v33 }
  0x21   :  { %263 = vmatpush.msrb.mxu1 %v75_v19  ;;  %714 = vmatmul.msk.f32.vlgmr.msrb.gmra.mxu2 %vm93_vm0, %v712_v32 }
  0x22   :  { %359 = vmatpush.msra.mxu0 %v878_v17  ;;  %474 = vmatpush.msra.mxu2 %v878_v17 }
  0x23   :  { %264 = vmatpush.msrb.mxu1 %v74_v22  ;;  %325 = vmatpush.msrb.mxu3 %v42_v41 }
  0x24   :  { %710 = vmatmul.msk.f32.vlgmr.msrb.gmra.mxu1 %vm93_vm0, %v704_v34  ;;  %451 = vmatpush.msrb.mxu0 %v878_v17 }
  0x25   :  { %398 = vmatpush.msra.mxu1 %v45_v38  ;;  %326 = vmatpush.msrb.mxu3 %v41_v42 }
  0x27   :  { %399 = vmatpush.msra.mxu1 %v44_v39  ;;  %327 = vmatpush.msrb.mxu3 %v40_v44 }
  0x28   :  { %709 = vmatmul.msk.f32.gmra.mxu0 %vm93_vm0, %v707_v36 }
  0x29   :  { %715 = vmatmul.msk.f32.gmra.mxu2 %vm93_vm0, %v713_v35  ;;  %400 = vmatpush.msra.mxu1 %v43_v40 }
  0x2a   :  { %328 = vmatpush.msrb.mxu3 %v39_v45 }
  0x2b   :  { %401 = vmatpush.msra.mxu1 %v42_v41 }
  0x2c   :  { %711 = vmatmul.msk.f32.gmra.mxu1 %vm93_vm0, %v705_v37  ;;  %329 = vmatpush.msrb.mxu3 %v38_v48 }
  0x2d   :  { %402 = vmatpush.msra.mxu1 %v41_v42 }
  0x2e   :  { %330 = vmatpush.msrb.mxu3 %v37_v49 }
  0x2f   :  { %403 = vmatpush.msra.mxu1 %v40_v44 }
  0x30   :  { %331 = vmatpush.msrb.mxu3 %v36_v52 }
  0x31   :  { %404 = vmatpush.msra.mxu1 %v39_v45 }
  0x32   :  { %332 = vmatpush.msrb.mxu3 %v35_v53 }
  0x33   :  { %405 = vmatpush.msra.mxu1 %v38_v48 }
  0x34   :  { %333 = vmatpush.msrb.mxu3 %v34_v55 }
  0x35   :  { %406 = vmatpush.msra.mxu1 %v37_v49 }
  0x36   :  { %334 = vmatpush.msrb.mxu3 %v33_v58 }
  0x37   :  { %407 = vmatpush.msra.mxu1 %v36_v52 }
  0x38   :  { %335 = vmatpush.msrb.mxu3 %v32_v62 }
  0x39   :  { %408 = vmatpush.msra.mxu1 %v35_v53 }
  0x3b   :  { %409 = vmatpush.msra.mxu1 %v34_v55 }
  0x3d   :  { %410 = vmatpush.msra.mxu1 %v33_v58 }
  0x3f   :  { %411 = vmatpush.msra.mxu1 %v32_v62 }
  0x8c   :  { %v69_v50 = vpop.f32.mrf.mxu0 }
  0x8d   :  { %v194_v59 = vperm.slane %v69_v50, 0 }
  0x91   :  { %v117_v43 = vpop.f32.mrf.mxu1 }
  0x94   :  { %v146_v46 = vpop.f32.mrf.mxu2 }
  0x95   :  { %v186_v47 = vpop.f32.mrf.mxu3  ;;  %v147_v54 = vadd.f32 %v146_v46, %v117_v43 }
  0x97   :  { %v192_v60 = vadd.f32 %v186_v47, %v147_v54 }
  0x99   :  { %v120_v51 = vpop.f32.mrf.mxu1  ;;  %v1003_v2 = vadd.f32 %v194_v59, %v192_v60 }
  0x9b   :  { %v198_v6 = vsel %vm197_vm3, %v1003_v2, 0.0 }
  0x9c   :  { %v149_v56 = vpop.f32.mrf.mxu2 }
  0x9d   :  { %v189_v57 = vpop.f32.mrf.mxu3  ;;  %v150_v61 = vadd.f32 %v149_v56, %v120_v51  ;;  %v237_v0 = vpop.f32.mrf.mxu0 }
  0x9f   :  { %v193_v63 = vadd.f32 %v189_v57, %v150_v61 }
  0xa1   :  { %v266_v1 = vpop.f32.mrf.mxu1  ;;  %v1005_v3 = vadd.f32 %v194_v59, %v193_v63 }
  0xa2   :  { %v267_v7 = vadd.f32 %v266_v1, %v237_v0 }
  0xa3   :  { %v200_v4 = vsel %vm199_vm2, %v1005_v3, 0.0 }
  0xa4   :  { %v297_v5 = vpop.f32.mrf.mxu2  ;;  %v201_v8 = vadd.f32 %v200_v4, %v198_v6 }
  0xa5   :  { %v240_v9 = vpop.f32.mrf.mxu0  ;;  %v303_v11 = vadd.f32 %v297_v5, %v267_v7 }
  0xa6   :  { %v202_v13 = vrot.slane %v201_v8, 4 }
  0xa7   :  { %v1011_v15 = vadd.f32 %v303_v11, %v194_v59 }
  0xa8   :  { %v203_v17 = vadd.f32 %v202_v13, %v201_v8 }
  0xa9   :  { %v269_v10 = vpop.f32.mrf.mxu1  ;;  %v307_v19 = vsel %vm197_vm3, %v1011_v15, 0.0 }
  0xaa   :  { %v270_v12 = vadd.f32 %v269_v10, %v240_v9  ;;  %v204_v21 = vrot.slane %v203_v17, 2  ;;  %v417_v10 = vld [vmem:[%s1121_s3] sm:$0x1] }
  0xac   :  { %v300_v14 = vpop.f32.mrf.mxu2  ;;  %v205_v25 = vadd.f32 %v204_v21, %v203_v17 }
  0xad   :  { %v304_v16 = vadd.f32 %v300_v14, %v270_v12  ;;  %v430_v14 = vld [vmem:[%s1122_s4] sm:$0x1] }
  0xae   :  { %v206_v27 = vrot.slane %v205_v25, 1 }
  0xaf   :  { %v1013_v18 = vadd.f32 %v304_v16, %v194_v59 }
  0xb0   :  { %v207_v30 = vadd.f32 %v206_v27, %v205_v25 }
  0xb1   :  { %v308_v20 = vsel %vm199_vm2, %v1013_v18, 0.0 }
  0xb2   :  { %v309_v22 = vadd.f32 %v308_v20, %v307_v19 }
  0xb4   :  { %v310_v23 = vrot.slane %v309_v22, 4 }
  0xb6   :  { %v311_v24 = vadd.f32 %v310_v23, %v309_v22 }
  0xb8   :  { %v312_v26 = vrot.slane %v311_v24, 2 }
  0xba   :  { %v313_v28 = vadd.f32 %v312_v26, %v311_v24 }
  0xbc   :  { %v314_v29 = vrot.slane %v313_v28, 1 }
  0xbe   :  { %v315_v31 = vadd.f32 %v314_v29, %v313_v28 }
  0xc0   :  { %v316_v32 = vadd.f32 %v315_v31, %v207_v30 }
  0xc2   :  { %716 = vmatmul.msk.f32.vlgmr.msrb.gmra.mxu3 %vm197_vm3, %v316_v32 }
 0x145   :  { %v337_v33 = vpop.f32.mrf.mxu3 }
 0x146   :  { %v340_v34 = vmul.f32 0.0025510204, %v337_v33 }
 0x148   :  { %717 = vmatmul.msk.f32.vlgmr.msra.gmra.mxu0 %vm48_vm1, %v340_v34 }
 0x1c5   :  { %v361_v35 = vpop.f32.mrf.mxu0 }
 0x1c6   :  { %v364_v36 = vperm.slane %v361_v35, 0 }
 0x1c8   :  { %v365_v37 = vsub.f32 %v1003_v2, %v364_v36  ;;  %v366_v38 = vsub.f32 %v1005_v3, %v364_v36  ;;  %v379_v39 = vsub.f32 %v1011_v15, %v364_v36  ;;  %v380_v40 = vsub.f32 %v1013_v18, %v364_v36 }
 0x1ca   :  { %v367_v41 = vmul.f32 %v365_v37, %v365_v37  ;;  %v368_v42 = vmul.f32 %v366_v38, %v366_v38  ;;  %v381_v43 = vmul.f32 %v379_v39, %v379_v39  ;;  %v382_v44 = vmul.f32 %v380_v40, %v380_v40 }
 0x1cc   :  { %v369_v45 = vsel %vm197_vm3, %v367_v41, 0.0  ;;  %v370_v46 = vsel %vm199_vm2, %v368_v42, 0.0  ;;  %v383_v47 = vsel %vm197_vm3, %v381_v43, 0.0  ;;  %v384_v48 = vsel %vm199_vm2, %v382_v44, 0.0 }
 0x1cd   :  { %v371_v49 = vadd.f32 %v370_v46, %v369_v45  ;;  %v385_v50 = vadd.f32 %v384_v48, %v383_v47 }
 0x1cf   :  { %v372_v51 = vrot.slane %v371_v49, 4  ;;  %v386_v52 = vrot.slane %v385_v50, 4 }
 0x1d1   :  { %v373_v53 = vadd.f32 %v372_v51, %v371_v49  ;;  %v387_v54 = vadd.f32 %v386_v52, %v385_v50 }
 0x1d3   :  { %v374_v55 = vrot.slane %v373_v53, 2  ;;  %v388_v56 = vrot.slane %v387_v54, 2 }
 0x1d5   :  { %v375_v57 = vadd.f32 %v374_v55, %v373_v53  ;;  %v389_v58 = vadd.f32 %v388_v56, %v387_v54 }
 0x1d7   :  { %v376_v59 = vrot.slane %v375_v57, 1  ;;  %v390_v60 = vrot.slane %v389_v58, 1 }
 0x1d9   :  { %v377_v61 = vadd.f32 %v376_v59, %v375_v57  ;;  %v391_v62 = vadd.f32 %v390_v60, %v389_v58 }
 0x1db   :  { %v392_v63 = vadd.f32 %v391_v62, %v377_v61 }
 0x1dd   :  { %718 = vmatmul.msk.f32.vlgmr.msra.gmra.mxu1 %vm197_vm3, %v392_v63 }
 0x25a   :  { %v413_v0 = vpop.f32.mrf.mxu1 }
 0x25b   :  { %v416_v1 = vmul.f32 0.0025510204, %v413_v0 }
 0x25d   :  { %v418_v4 = vadd.f32 1e-05, %v416_v1 }
 0x25f   :  { %752 = vrsqrt.f32 %v418_v4  ;;  %vm425_vm5 = vweird.f32 %v418_v4 }
 0x265   :  { %v753_v5 = vpop.eup %752 }
 0x266   :  { %v420_v6 = vmul.f32 %v753_v5, %v418_v4  ;;  %vm426_vm4 = vweird.f32 %v753_v5 }
 0x267   :  { %vm427_vm6 = vmor %vm425_vm5, %vm426_vm4 }
 0x268   :  { %v421_v7 = vmul.f32 %v753_v5, %v420_v6 }
 0x26a   :  { %v422_v8 = vmul.f32 0.5, %v421_v7 }
 0x26c   :  { %v423_v9 = vsub.f32 1.5, %v422_v8 }
 0x26e   :  { %v424_v11 = vmul.f32 %v753_v5, %v423_v9 }
 0x270   :  { %v428_v12 = vsel %vm427_vm6, %v753_v5, %v424_v11 }
 0x271   :  { %v429_v13 = vmul.f32 %v428_v12, %v417_v10 }
 0x273   :  { %v431_v16 = vmul.f32 %v429_v13, %v340_v34  ;;  %719 = vmatmul.msk.f32.vlgmr.msrb.gmra.mxu0 %vm48_vm1, %v429_v13 }
 0x275   :  { %v432_v17 = vsub.f32 %v430_v14, %v431_v16 }
 0x277   :  { %720 = vmatmul.msk.f32.vlgmr.msra.gmra.mxu2 %vm48_vm1, %v432_v17 }
 0x2f0   :  { %v453_v19 = vpop.f32.mrf.mxu0 }
 0x2f1   :  { %v481_v20 = vperm.slane %v453_v19, 0 }
 0x2f3   :  { %v483_v22 = vmul.f32 %v481_v20, %v1005_v3  ;;  %v585_v23 = vmul.f32 %v481_v20, %v1013_v18  ;;  %v482_v25 = vmul.f32 %v481_v20, %v1003_v2  ;;  %v584_v26 = vmul.f32 %v481_v20, %v1011_v15  ;;  %v480_v3 = vld [vmem:[%s1123_s8] sm:$0x7f]  ;;  %s754_s8 = smov 72  }
 0x2f4   :  { %v479_v15 = vld [vmem:[%s1124_s7] sm:$0x7f] }
 0x2fa   :  { %v476_v21 = vpop.f32.mrf.mxu2 }
 0x2fb   :  { %v484_v24 = vperm.slane %v476_v21, 0 }
 0x2fd   :  { %v486_v27 = vadd.f32 %v484_v24, %v483_v22  ;;  %v587_v28 = vadd.f32 %v585_v23, %v484_v24  ;;  %v485_v29 = vadd.f32 %v484_v24, %v482_v25  ;;  %v586_v30 = vadd.f32 %v584_v26, %v484_v24 }
 0x2ff   :  { %v488_v31 = vmax.f32 %v486_v27, 0.0  ;;  %v589_v32 = vmax.f32 %v587_v28, 0.0  ;;  %v487_v33 = vmax.f32 %v485_v29, 0.0  ;;  %v588_v2 = vmax.f32 %v586_v30, 0.0 }
 0x301   :  { %721 = vmatpush.msk.msra.mxu0 %vm493_vm7, %v488_v31  ;;  %723 = vmatpush.msk.msra.mxu3 %vm493_vm7, %v488_v31 }
 0x302   :  { %732 = vmatpush.msk.msrb.mxu2 %vm493_vm7, %v589_v32 }
 0x303   :  { %512 = vmatpush.msra.mxu0 %v487_v33  ;;  %535 = vmatpush.msra.mxu3 %v487_v33 }
 0x304   :  { %608 = vmatpush.msrb.mxu2 %v588_v2  ;;  %724 = vmatmul.msk.f32.vlgmr.msra.gmra.mxu3 %vm489_vm8, %v480_v3 }
 0x305   :  { %734 = vmatpush.msk.msrb.mxu0 %vm493_vm7, %v589_v32  ;;  %733 = vmatmul.msk.f32.vlgmr.msrb.gmra.mxu2 %vm489_vm8, %v479_v15 }
 0x306   :  { %722 = vmatmul.msk.f32.vlgmr.msra.gmra.mxu0 %vm489_vm8, %v479_v15 }
 0x307   :  { %628 = vmatpush.msrb.mxu0 %v588_v2 }
 0x30e   :  { %735 = vmatmul.msk.f32.vlgmr.msrb.gmra.mxu0 %vm489_vm8, %v480_v3 }
 0x383   :  { %v514_v18 = vpop.f32.mrf.mxu0 }
 0x387   :  { %v537_v34 = vpop.f32.mrf.mxu3 }
 0x388   :  { %v540_v35 = vmax.f32 %v514_v18, %v537_v34  ;;  %v610_v36 = vpop.f32.mrf.mxu2 }
 0x38a   :  { %542 = vrot.lane.b32.xlu0 %v540_v35, %s754_s8 }
 0x38b   :  { %v630_v37 = vpop.f32.mrf.mxu0 }
 0x38c   :  { %v633_v38 = vmax.f32 %v610_v36, %v630_v37 }
 0x392   :  { %635 = vrot.lane.b32.xlu0 %v633_v38, %s754_s8 }
 0x3fc   :  { %v543_v39 = vpop.permute.xlu0 %542 }
 0x3fd   :  { %v545_v40 = vmax.f32 %v540_v35, %v543_v39 }
 0x3ff   :  { %547 = vst.msk [vmem:[%s1125_s9] sm:$0x7f] %vm546_vm9, %v545_v40  ;;  %569 = vrot.lane.b32.xlu0 %v545_v40, %s755_s24  ;;  %559 = vrot.lane.b32.xlu2 %v545_v40, %s756_s25 }
 0x400   :  { %549 = vrot.lane.b32.xlu1 %v545_v40, %s757_s26 }
 0x404   :  { %v636_v41 = vpop.permute.xlu0 %635 }
 0x405   :  { %v638_v42 = vmax.f32 %v633_v38, %v636_v41 }
 0x407   :  { %736 = vst.msk [vmem:[%s1125_s9 + $0x40] sm:$0x7f] %vm546_vm9, %v638_v42  ;;  %564 = vrot.lane.b32.xlu2 %v545_v40, %s758_s29  ;;  %642 = vrot.lane.b32.xlu0 %v638_v42, %s757_s26 }
 0x408   :  { %554 = vrot.lane.b32.xlu1 %v545_v40, %s759_s6 }
 0x40f   :  { %579 = vrot.lane.b32.xlu2 %v545_v40, %s760_s30  ;;  %657 = vrot.lane.b32.xlu0 %v638_v42, %s758_s29 }
 0x410   :  { %574 = vrot.lane.b32.xlu1 %v545_v40, %s761_s10 }
 0x417   :  { %652 = vrot.lane.b32.xlu2 %v638_v42, %s756_s25  ;;  %672 = vrot.lane.b32.xlu0 %v638_v42, %s760_s30 }
 0x418   :  { %647 = vrot.lane.b32.xlu1 %v638_v42, %s759_s6 }
 0x41f   :  { %667 = vrot.lane.b32.xlu2 %v638_v42, %s761_s10 }
 0x420   :  { %662 = vrot.lane.b32.xlu1 %v638_v42, %s755_s24 }
 0x459   :  { %v560_v43 = vpop.permute.xlu2 %559 }
 0x45a   :  { %727 = vst.msk [vmem:[%s1125_s9 + $0x18] sm:$0x7f] %vm546_vm9, %v560_v43 }
 0x461   :  { %v565_v44 = vpop.permute.xlu2 %564 }
 0x462   :  { %728 = vst.msk [vmem:[%s1125_s9 + $0x20] sm:$0x7f] %vm546_vm9, %v565_v44 }
 0x469   :  { %v580_v45 = vpop.permute.xlu2 %579 }
 0x46a   :  { %731 = vst.msk [vmem:[%s1125_s9 + $0x38] sm:$0x7f] %vm546_vm9, %v580_v45 }
 0x471   :  { %v653_v46 = vpop.permute.xlu2 %652  ;;  %v570_v47 = vpop.permute.xlu0 %569 }
 0x472   :  { %v550_v48 = vpop.permute.xlu1 %549  ;;  %739 = vst.msk [vmem:[%s1125_s9 + $0x58] sm:$0x7f] %vm546_vm9, %v653_v46 }
 0x473   :  { %725 = vst.msk [vmem:[%s1125_s9 + $0x8] sm:$0x7f] %vm546_vm9, %v550_v48 }
 0x474   :  { %729 = vst.msk [vmem:[%s1125_s9 + $0x28] sm:$0x7f] %vm546_vm9, %v570_v47 }
 0x479   :  { %v668_v49 = vpop.permute.xlu2 %667  ;;  %v643_v50 = vpop.permute.xlu0 %642 }
 0x47a   :  { %v555_v51 = vpop.permute.xlu1 %554  ;;  %742 = vst.msk [vmem:[%s1125_s9 + $0x70] sm:$0x7f] %vm546_vm9, %v668_v49 }
 0x47b   :  { %726 = vst.msk [vmem:[%s1125_s9 + $0x10] sm:$0x7f] %vm546_vm9, %v555_v51 }
 0x47c   :  { %737 = vst.msk [vmem:[%s1125_s9 + $0x48] sm:$0x7f] %vm546_vm9, %v643_v50 }
 0x481   :  { %v658_v52 = vpop.permute.xlu0 %657 }
 0x482   :  { %v575_v53 = vpop.permute.xlu1 %574  ;;  %740 = vst.msk [vmem:[%s1125_s9 + $0x60] sm:$0x7f] %vm546_vm9, %v658_v52 }
 0x483   :  { %730 = vst.msk [vmem:[%s1125_s9 + $0x30] sm:$0x7f] %vm546_vm9, %v575_v53 }
 0x489   :  { %v673_v54 = vpop.permute.xlu0 %672 }
 0x48a   :  { %v648_v55 = vpop.permute.xlu1 %647  ;;  %743 = vst.msk [vmem:[%s1125_s9 + $0x78] sm:$0x7f] %vm546_vm9, %v673_v54 }
 0x48b   :  { %738 = vst.msk [vmem:[%s1125_s9 + $0x50] sm:$0x7f] %vm546_vm9, %v648_v55 }
 0x492   :  { %v663_v56 = vpop.permute.xlu1 %662 }
 0x493   :  { %741 = vst.msk [vmem:[%s1125_s9 + $0x68] sm:$0x7f] %vm546_vm9, %v663_v56 }

</bundles_post_ra>
